<compile_context>
chip_gen: v7x
topology: tpu7x:2x2x1
jax: 0.10.0
libtpu: 0.0.40
codegen_flags: <defaults>
</compile_context>

<pallas_src>
import functools

import jax
import jax.numpy as jnp
from jax.experimental import pallas as pl
from jax.experimental.pallas import tpu as pltpu

HIDDEN = 32


def _mlp_kernel(x1_ref, x2_ref, w1a_ref, w1b_ref, b1_ref,
                w2_ref, b2_ref, w3_ref, b3_ref, o_ref):
    # h1 = relu(x1 @ W1a + x2 @ W1b + b1)   (split-K replaces the torch.cat)
    h1 = (jnp.dot(x1_ref[...], w1a_ref[...], preferred_element_type=jnp.float32)
          + jnp.dot(x2_ref[...], w1b_ref[...], preferred_element_type=jnp.float32)
          + b1_ref[...])
    h1 = jnp.maximum(h1, 0.0)
    # Elementwise math stays f32 (v5e has no bf16 VPU); only matmul inputs
    # are cast down when the bf16 path is used.
    h2 = (jnp.dot(h1.astype(w2_ref.dtype), w2_ref[...],
                  preferred_element_type=jnp.float32) + b2_ref[...])
    h2 = jnp.maximum(h2, 0.0)
    out = (jnp.dot(h2.astype(w3_ref.dtype), w3_ref[...],
                   preferred_element_type=jnp.float32) + b3_ref[...])
    o_ref[...] = out.astype(o_ref.dtype)


def prepare_params(params, d1, act_dtype=jnp.float32):
    """One-time prep: transpose PyTorch (out,in) weights to (in,out), split W1
    along its input dim into the x1/x2 halves, reshape biases to (1, out).
    Call this once and cache the result; do NOT redo it per forward call."""
    w1, b1, w2, b2, w3, b3 = params
    w1t = jnp.asarray(w1, jnp.float32).T          # (n_in, 32)
    w1a = w1t[:d1].astype(act_dtype)              # (d1, 32)
    w1b = w1t[d1:].astype(act_dtype)              # (d2, 32)
    w2t = jnp.asarray(w2, jnp.float32).T.astype(act_dtype)   # (32, 32)
    w3t = jnp.asarray(w3, jnp.float32).T.astype(act_dtype)   # (32, n_out)
    b1r = jnp.asarray(b1, jnp.float32).reshape(1, -1)         # biases stay f32
    b2r = jnp.asarray(b2, jnp.float32).reshape(1, -1)
    b3r = jnp.asarray(b3, jnp.float32).reshape(1, -1)
    return (w1a, w1b, b1r, w2t, b2r, w3t, b3r)


def goal_cond_grid_simple_net(x1, x2, prepared, *, block_batch=2048,
                              act_dtype=jnp.float32):
    """Forward pass. x1: (B, d1), x2: (B, d2); `prepared` from prepare_params."""
    assert block_batch % 8 == 0, "batch tile must be a multiple of 8 sublanes"
    w1a, w1b, b1r, w2t, b2r, w3t, b3r = prepared

    batch, d1 = x1.shape
    d2 = x2.shape[1]
    n_out = w3t.shape[1]

    x1 = x1.astype(act_dtype)
    x2 = x2.astype(act_dtype)

    # Pad batch up to a multiple of the batch tile (tile itself capped so
    # 2x double-buffered input/output tiles stay far below v7x's VMEM limit).
    b8 = pl.cdiv(batch, 8) * 8
    tb = min(block_batch, b8)
    bp = pl.cdiv(b8, tb) * tb
    if bp != batch:
        x1 = jnp.pad(x1, ((0, bp - batch), (0, 0)))
        x2 = jnp.pad(x2, ((0, bp - batch), (0, 0)))
    grid = (bp // tb,)

    act_bytes = jnp.dtype(act_dtype).itemsize
    weight_bytes = sum(int(w.size) * w.dtype.itemsize for w in prepared)
    cost = pl.CostEstimate(
        flops=2 * batch * ((d1 + d2) * HIDDEN + HIDDEN * HIDDEN + HIDDEN * n_out),
        transcendentals=0,
        bytes_accessed=batch * (d1 + d2) * act_bytes + batch * n_out * 4
        + weight_bytes,
    )

    def row_tile(feat):          # streamed per-grid-step activation tile
        return pl.BlockSpec((tb, feat), lambda i: (i, 0))

    def pinned(arr):             # VMEM-resident across all grid steps
        return pl.BlockSpec(arr.shape, lambda i: (0, 0))

    out = pl.pallas_call(
        _mlp_kernel,
        out_shape=jax.ShapeDtypeStruct((bp, n_out), jnp.float32),
        grid=grid,
        in_specs=[
            row_tile(d1), row_tile(d2),
            pinned(w1a), pinned(w1b), pinned(b1r),
            pinned(w2t), pinned(b2r),
            pinned(w3t), pinned(b3r),
        ],
        out_specs=pl.BlockSpec((tb, n_out), lambda i: (i, 0)),
        compiler_params=pltpu.CompilerParams(
            dimension_semantics=("parallel",)),
        cost_estimate=cost,
    )(x1, x2, w1a, w1b, b1r, w2t, b2r, w3t, b3r)

    return out[:batch] if bp != batch else out


def init_params(key, n_in, n_out, hidden=HIDDEN):
    """Deterministic synthetic parameters, PyTorch nn.Linear shapes (out, in)."""
    ks = jax.random.split(key, 6)
    w1 = jax.random.normal(ks[0], (hidden, n_in), jnp.float32) * 0.1
    b1 = jax.random.normal(ks[1], (hidden,), jnp.float32) * 0.1
    w2 = jax.random.normal(ks[2], (hidden, hidden), jnp.float32) * 0.1
    b2 = jax.random.normal(ks[3], (hidden,), jnp.float32) * 0.1
    w3 = jax.random.normal(ks[4], (n_out, hidden), jnp.float32) * 0.1
    b3 = jax.random.normal(ks[5], (n_out,), jnp.float32) * 0.1
    return (w1, b1, w2, b2, w3, b3)


def reference_forward(x1, x2, params):
    """Pure-JAX reference mirroring the PyTorch module."""
    w1, b1, w2, b2, w3, b3 = params
    x = jnp.concatenate((x1, x2), axis=-1)
    h1 = jax.nn.relu(x @ w1.T + b1)
    h2 = jax.nn.relu(h1 @ w2.T + b2)
    return h2 @ w3.T + b3


if __name__ == "__main__":
    key = jax.random.PRNGKey(0)
    k_p, k_x1, k_x2 = jax.random.split(key, 3)

    batch, d1, d2, n_out = 8, 8, 8, 4
    n_in = d1 + d2

    params = init_params(k_p, n_in, n_out)
    x1 = jax.random.normal(k_x1, (batch, d1), jnp.float32)
    x2 = jax.random.normal(k_x2, (batch, d2), jnp.float32)
    ref = reference_forward(x1, x2, params)

    # f32 path: params prepared once (transposes hoisted out of the hot path).
    prepared_f32 = prepare_params(params, d1, act_dtype=jnp.float32)
    fwd = jax.jit(functools.partial(goal_cond_grid_simple_net,
                                    block_batch=2048, act_dtype=jnp.float32))
    out = jax.block_until_ready(fwd(x1, x2, prepared_f32))
    assert out.shape == (batch, n_out)
    assert jnp.allclose(out, ref, atol=1e-5, rtol=1e-5)

    # bf16 activation/weight path (halves HBM bytes on v6e/v7x); f32 MXU accum.
    prepared_bf16 = prepare_params(params, d1, act_dtype=jnp.bfloat16)
    out_bf16 = jax.block_until_ready(
        goal_cond_grid_simple_net(x1, x2, prepared_bf16,
                                  block_batch=2048, act_dtype=jnp.bfloat16))
    assert out_bf16.shape == (batch, n_out)
    assert jnp.allclose(out_bf16, ref, atol=1e-1, rtol=1e-1)

    print("KERNEL_OK")
</pallas_src>

<mosaic_0001>
module attributes {stable_mosaic.version = 11 : i64} {
  func.func @_mlp_kernel(%arg0: i32, %arg1: memref<8x8xf32, #tpu.memory_space<vmem>>, %arg2: memref<8x8xf32, #tpu.memory_space<vmem>>, %arg3: memref<8x32xf32, #tpu.memory_space<vmem>>, %arg4: memref<8x32xf32, #tpu.memory_space<vmem>>, %arg5: memref<1x32xf32, #tpu.memory_space<vmem>>, %arg6: memref<32x32xf32, #tpu.memory_space<vmem>>, %arg7: memref<1x32xf32, #tpu.memory_space<vmem>>, %arg8: memref<32x4xf32, #tpu.memory_space<vmem>>, %arg9: memref<1x4xf32, #tpu.memory_space<vmem>>, %arg10: memref<8x4xf32, #tpu.memory_space<vmem>>) attributes {dimension_semantics = [#tpu.dimension_semantics<parallel>], iteration_bounds = array<i64: 1>, scalar_prefetch = 0 : i64, scratch_operands = 0 : i64, tpu.core_type = #tpu.core_type<tc>, window_params = [{transform_indices = @transform_0, window_bounds = array<i64: 8, 8>}, {transform_indices = @transform_1, window_bounds = array<i64: 8, 8>}, {pipeline_mode = #tpu.pipeline_mode<synchronous>, transform_indices = @transform_2, window_bounds = array<i64: 8, 32>}, {pipeline_mode = #tpu.pipeline_mode<synchronous>, transform_indices = @transform_3, window_bounds = array<i64: 8, 32>}, {pipeline_mode = #tpu.pipeline_mode<synchronous>, transform_indices = @transform_4, window_bounds = array<i64: 1, 32>}, {pipeline_mode = #tpu.pipeline_mode<synchronous>, transform_indices = @transform_5, window_bounds = array<i64: 32, 32>}, {pipeline_mode = #tpu.pipeline_mode<synchronous>, transform_indices = @transform_6, window_bounds = array<i64: 1, 32>}, {pipeline_mode = #tpu.pipeline_mode<synchronous>, transform_indices = @transform_7, window_bounds = array<i64: 32, 4>}, {pipeline_mode = #tpu.pipeline_mode<synchronous>, transform_indices = @transform_8, window_bounds = array<i64: 1, 4>}, {transform_indices = @transform_9, window_bounds = array<i64: 8, 4>}]} {
    %c0 = arith.constant 0 : index
    %c0_0 = arith.constant 0 : index
    %0 = vector.load %arg1[%c0, %c0_0] : memref<8x8xf32, #tpu.memory_space<vmem>>, vector<8x8xf32>
    %c0_1 = arith.constant 0 : index
    %c0_2 = arith.constant 0 : index
    %1 = vector.load %arg3[%c0_1, %c0_2] : memref<8x32xf32, #tpu.memory_space<vmem>>, vector<8x32xf32>
    %cst = arith.constant dense<0.000000e+00> : vector<8x32xf32>
    %2 = tpu.matmul %0, %1, %cst {dimension_numbers = #tpu.dot_dimension_numbers<[1], [0], [0], [1], [0, 0, 1, 1], [], []>} : vector<8x8xf32>, vector<8x32xf32>, vector<8x32xf32> -> vector<8x32xf32>
    %c0_3 = arith.constant 0 : index
    %c0_4 = arith.constant 0 : index
    %3 = vector.load %arg2[%c0_3, %c0_4] : memref<8x8xf32, #tpu.memory_space<vmem>>, vector<8x8xf32>
    %c0_5 = arith.constant 0 : index
    %c0_6 = arith.constant 0 : index
    %4 = vector.load %arg4[%c0_5, %c0_6] : memref<8x32xf32, #tpu.memory_space<vmem>>, vector<8x32xf32>
    %cst_7 = arith.constant dense<0.000000e+00> : vector<8x32xf32>
    %5 = tpu.matmul %3, %4, %cst_7 {dimension_numbers = #tpu.dot_dimension_numbers<[1], [0], [0], [1], [0, 0, 1, 1], [], []>} : vector<8x8xf32>, vector<8x32xf32>, vector<8x32xf32> -> vector<8x32xf32>
    %6 = arith.addf %2, %5 : vector<8x32xf32>
    %c0_8 = arith.constant 0 : index
    %c0_9 = arith.constant 0 : index
    %7 = vector.load %arg5[%c0_8, %c0_9] : memref<1x32xf32, #tpu.memory_space<vmem>>, vector<1x32xf32>
    %8 = vector.broadcast %7 : vector<1x32xf32> to vector<8x32xf32>
    %9 = arith.addf %6, %8 : vector<8x32xf32>
    %cst_10 = arith.constant 0.000000e+00 : f32
    %10 = vector.broadcast %cst_10 : f32 to vector<8x32xf32>
    %11 = arith.maximumf %9, %10 : vector<8x32xf32>
    %c0_11 = arith.constant 0 : index
    %c0_12 = arith.constant 0 : index
    %12 = vector.load %arg6[%c0_11, %c0_12] : memref<32x32xf32, #tpu.memory_space<vmem>>, vector<32x32xf32>
    %cst_13 = arith.constant dense<0.000000e+00> : vector<8x32xf32>
    %13 = tpu.matmul %11, %12, %cst_13 {dimension_numbers = #tpu.dot_dimension_numbers<[1], [0], [0], [1], [0, 0, 1, 1], [], []>} : vector<8x32xf32>, vector<32x32xf32>, vector<8x32xf32> -> vector<8x32xf32>
    %c0_14 = arith.constant 0 : index
    %c0_15 = arith.constant 0 : index
    %14 = vector.load %arg7[%c0_14, %c0_15] : memref<1x32xf32, #tpu.memory_space<vmem>>, vector<1x32xf32>
    %15 = vector.broadcast %14 : vector<1x32xf32> to vector<8x32xf32>
    %16 = arith.addf %13, %15 : vector<8x32xf32>
    %cst_16 = arith.constant 0.000000e+00 : f32
    %17 = vector.broadcast %cst_16 : f32 to vector<8x32xf32>
    %18 = arith.maximumf %16, %17 : vector<8x32xf32>
    %c0_17 = arith.constant 0 : index
    %c0_18 = arith.constant 0 : index
    %19 = vector.load %arg8[%c0_17, %c0_18] : memref<32x4xf32, #tpu.memory_space<vmem>>, vector<32x4xf32>
    %cst_19 = arith.constant dense<0.000000e+00> : vector<8x4xf32>
    %20 = tpu.matmul %18, %19, %cst_19 {dimension_numbers = #tpu.dot_dimension_numbers<[1], [0], [0], [1], [0, 0, 1, 1], [], []>} : vector<8x32xf32>, vector<32x4xf32>, vector<8x4xf32> -> vector<8x4xf32>
    %c0_20 = arith.constant 0 : index
    %c0_21 = arith.constant 0 : index
    %21 = vector.load %arg9[%c0_20, %c0_21] : memref<1x4xf32, #tpu.memory_space<vmem>>, vector<1x4xf32>
    %22 = vector.broadcast %21 : vector<1x4xf32> to vector<8x4xf32>
    %23 = arith.addf %20, %22 : vector<8x4xf32>
    %c0_22 = arith.constant 0 : index
    %c0_23 = arith.constant 0 : index
    %24 = vector.load %arg10[%c0_22, %c0_23] : memref<8x4xf32, #tpu.memory_space<vmem>>, vector<8x4xf32>
    tpu.vector_store %arg10[%c0_22, %c0_23], %23 {strides = array<i32>} : memref<8x4xf32, #tpu.memory_space<vmem>>, vector<8x4xf32>,
    return
  }
  func.func @transform_0(%arg0: i32) -> (i32, i32) {
    %c0_i32 = arith.constant 0 : i32
    %c0_i32_0 = arith.constant 0 : i32
    return %arg0, %c0_i32 : i32, i32
  }
  func.func @transform_1(%arg0: i32) -> (i32, i32) {
    %c0_i32 = arith.constant 0 : i32
    %c0_i32_0 = arith.constant 0 : i32
    return %arg0, %c0_i32 : i32, i32
  }
  func.func @transform_2(%arg0: i32) -> (i32, i32) {
    %c0_i32 = arith.constant 0 : i32
    %c0_i32_0 = arith.constant 0 : i32
    %c0_i32_1 = arith.constant 0 : i32
    return %c0_i32, %c0_i32_0 : i32, i32
  }
  func.func @transform_3(%arg0: i32) -> (i32, i32) {
    %c0_i32 = arith.constant 0 : i32
    %c0_i32_0 = arith.constant 0 : i32
    %c0_i32_1 = arith.constant 0 : i32
    return %c0_i32, %c0_i32_0 : i32, i32
  }
  func.func @transform_4(%arg0: i32) -> (i32, i32) {
    %c0_i32 = arith.constant 0 : i32
    %c0_i32_0 = arith.constant 0 : i32
    %c0_i32_1 = arith.constant 0 : i32
    return %c0_i32, %c0_i32_0 : i32, i32
  }
  func.func @transform_5(%arg0: i32) -> (i32, i32) {
    %c0_i32 = arith.constant 0 : i32
    %c0_i32_0 = arith.constant 0 : i32
    %c0_i32_1 = arith.constant 0 : i32
    return %c0_i32, %c0_i32_0 : i32, i32
  }
  func.func @transform_6(%arg0: i32) -> (i32, i32) {
    %c0_i32 = arith.constant 0 : i32
    %c0_i32_0 = arith.constant 0 : i32
    %c0_i32_1 = arith.constant 0 : i32
    return %c0_i32, %c0_i32_0 : i32, i32
  }
  func.func @transform_7(%arg0: i32) -> (i32, i32) {
    %c0_i32 = arith.constant 0 : i32
    %c0_i32_0 = arith.constant 0 : i32
    %c0_i32_1 = arith.constant 0 : i32
    return %c0_i32, %c0_i32_0 : i32, i32
  }
  func.func @transform_8(%arg0: i32) -> (i32, i32) {
    %c0_i32 = arith.constant 0 : i32
    %c0_i32_0 = arith.constant 0 : i32
    %c0_i32_1 = arith.constant 0 : i32
    return %c0_i32, %c0_i32_0 : i32, i32
  }
  func.func @transform_9(%arg0: i32) -> (i32, i32) {
    %c0_i32 = arith.constant 0 : i32
    %c0_i32_0 = arith.constant 0 : i32
    return %arg0, %c0_i32 : i32, i32
  }
}

</mosaic_0001>

<bundles_post_ra>
// kernel: goal_cond_grid_simple_net.1
= control target key start
LH: loop header
LB: loop body
LE: loop exit
PB: predicated region body
PF: predicated region fallthrough
CT: control target
= control target key end

     0   :  { %14 = vsyncpa [#allocation3], 0  ;;  %s637_s0 = inlined_call_operand.vmem [shape: f32[8,8], index: 0, kind: input, shape index: {}]   ;;  %s638_s1 = inlined_call_operand.vmem [shape: f32[8,8], index: 1, kind: input, shape index: {}]   ;;  %s639_s2 = inlined_call_operand.hbm [shape: f32[8,32], index: 2, kind: input, shape index: {}]   ;;  %s640_s3 = inlined_call_operand.hbm [shape: f32[8,32], index: 3, kind: input, shape index: {}]   ;;  %s641_s4 = inlined_call_operand.vmem [shape: f32[1,32], index: 4, kind: input, shape index: {}]   ;;  %s642_s5 = inlined_call_operand.vmem [shape: f32[32,32], index: 5, kind: input, shape index: {}]   ;;  %s643_s6 = inlined_call_operand.vmem [shape: f32[1,32], index: 6, kind: input, shape index: {}]   ;;  %s644_s7 = inlined_call_operand.vmem [shape: f32[32,4], index: 7, kind: input, shape index: {}]   ;;  %s645_s8 = inlined_call_operand.vmem [shape: f32[1,4], index: 8, kind: input, shape index: {}]   ;;  %s646_s9 = inlined_call_operand.vmem [shape: f32[8,4], index: 9, kind: output, shape index: {}]  }
   0x1   :  { %15 = vsyncpa [#allocation5], 0  ;;  %s512_s30 = smov [#allocation2]   ;;  %s513_s11 = smov [#allocation4]  }
   0x2   :  { %s26_s10 = sshll.u32 %s512_s30, 4  ;;  %s36_s12 = sshll.u32 %s513_s11, 4  ;;  %s27_s10 = int_to_ptr.vmem [resolvable:$true] %s26_s10  ;;  %s37_s12 = int_to_ptr.vmem [resolvable:$true] %s36_s12 }
   0x3   :  { %s464_s15 = scalar_lea.hbm %s639_s2, 128 }
   0x4   :  { %p465_p0 = scmp.ne.s32.totalorder %s639_s2, %s464_s15  ;;  %p468_p1 = scmp.lt.u32.totalorder %s464_s15, %s639_s2 }
   0x6   :  { %p470_p2 = pnand %p468_p1, %p465_p0 }
   0x8   :  { %473 = shalt.err (!%p470_p2)
}
   0x9   :  { %s474_s20 = scalar_lea.vmem %s27_s10, 128  ;;  %p479_p4 = scmp.lt.s32.totalorder %s27_s10, %s27_s10 }
   0xa   :  { %p475_p3 = scmp.ne.s32.totalorder %s27_s10, %s474_s20  ;;  %p480_p5 = scmp.lt.s32.totalorder %s474_s20, %s474_s20 }
   0xc   :  { %p481_p6 = por %p480_p5, %p479_p4 }
   0xe   :  { %p482_p7 = pnand %p481_p6, %p475_p3 }
  0x10   :  { %485 = shalt.err (!%p482_p7)
}
  0x11   :  { %29 = dma.hbm_to_vmem [thread:$0]  %s639_s2, 128, %s27_s10, [#allocation3]  }
  0x12   :  { %s486_s25 = scalar_lea.hbm %s640_s3, 128 }
  0x13   :  { %p487_p8 = scmp.ne.s32.totalorder %s640_s3, %s486_s25  ;;  %p490_p9 = scmp.lt.u32.totalorder %s486_s25, %s640_s3 }
  0x15   :  { %p492_p10 = pnand %p490_p9, %p487_p8 }
  0x17   :  { %495 = shalt.err (!%p492_p10)
}
  0x18   :  { %s496_s30 = scalar_lea.vmem %s37_s12, 128  ;;  %p501_p12 = scmp.lt.s32.totalorder %s37_s12, %s37_s12 }
  0x19   :  { %p497_p11 = scmp.ne.s32.totalorder %s37_s12, %s496_s30  ;;  %p502_p13 = scmp.lt.s32.totalorder %s496_s30, %s496_s30 }
  0x1b   :  { %p503_p0 = por %p502_p13, %p501_p12 }
  0x1d   :  { %p504_p1 = pnand %p503_p0, %p497_p11 }
  0x1f   :  { %507 = shalt.err (!%p504_p1)
}
  0x20   :  { %39 = dma.hbm_to_vmem [thread:$0]  %s640_s3, 128, %s37_s12, [#allocation5]  }
  0x21   :  { %508 = dma.done.wait [#allocation3], 128  }
  0x22   :  { %509 = vsyncadd [#allocation3], 4294967168 }
  0x23   :  { %510 = dma.done.wait [#allocation5], 128  }
  0x24   :  { %511 = vsyncadd [#allocation5], 4294967168  ;;  %v514_v0 = vmov 0.0   ;;  %vm515_vm0 = vmmov 0   ;;  %vm60_vm1 = vcmask 64512   ;;  %v59_v1 = vld [vmem:[#allocation4] sm:$0xff] }
  0x25   :  { %415 = vmatprep.subr.mxu0 %v514_v0  ;;  %420 = vmatprep.subr.mxu1 %v514_v0  ;;  %v57_v2 = vld [vmem:[#allocation2] sm:$0xff]  ;;  %v516_v5 = vmov 0.0|0.0   ;;  %v217_v7 = vld [vmem:[%s642_s5 + $0x8] sm:$0xff]  ;;  %v218_v9 = vld [vmem:[%s642_s5 + $0x10] sm:$0xff]  ;;  %vm227_vm2 = vcmask 261120   ;;  %vm386_vm3 = vcmask 31744  }
  0x26   :  { %417 = vmatprep.mubr.msk.f32.mxu0 %vm515_vm0, %v514_v0  ;;  %422 = vmatprep.mubr.msk.f32.mxu1 %vm515_vm0, %v514_v0  ;;  %v58_v3 = vld [vmem:[%s638_s1] sm:$0xff]  ;;  %v219_v10 = vld [vmem:[%s642_s5 + $0x18] sm:$0xff]  ;;  %v303_v13 = vld [vmem:[%s644_s7 + $0x8] sm:$0xff] }
  0x27   :  { %416 = vmatpush3.msra.mxu0 %v59_v1  ;;  %421 = vmatpush3.msra.mxu1 %v57_v2  ;;  %v56_v4 = vld [vmem:[%s637_s0] sm:$0xff]  ;;  %v451_v11 = vpack.c.bf16 %v219_v10, %v218_v9  ;;  %v304_v23 = vld [vmem:[%s644_s7 + $0x10] sm:$0xff]  ;;  %v305_v24 = vld [vmem:[%s644_s7 + $0x18] sm:$0xff] }
  0x28   :  { %418 = vmatmul.mubr.msk.f32.vlgmr.msra.gmra.mrb[0].mxu0 %vm60_vm1, %v58_v3  ;;  %423 = vmatmul.mubr.msk.f32.vlgmr.msra.gmra.mrb[0].mxu1 %vm60_vm1, %v56_v4  ;;  %v216_v6 = vld [vmem:[%s642_s5] sm:$0xff]  ;;  %v457_v25 = vpack.c.bf16 %v305_v24, %v304_v23 }
  0x29   :  { %447 = vmatprep.subr.bf16.mxu0 %v516_v5  ;;  %433 = vmatprep.mubr.msk.f32.mxu0 %vm515_vm0, %v514_v0  ;;  %v448_v8 = vpack.c.bf16 %v217_v7, %v216_v6  ;;  %v302_v12 = vld [vmem:[%s644_s7] sm:$0xff] }
  0x2a   :  { %453 = vmatprep.subr.bf16.mxu1 %v516_v5  ;;  %444 = vmatprep.mubr.msk.f32.mxu1 %vm515_vm0, %v514_v0  ;;  %v454_v14 = vpack.c.bf16 %v303_v13, %v302_v12  ;;  %v396_v17 = vld [vmem:[%s641_s4] ss:$0 sm:$0xff] }
  0x2b   :  { %449 = vmatpush3.bf16.msra.mxu0 %v448_v8  ;;  %v397_v26 = vld [vmem:[%s643_s6] ss:$0 sm:$0xff] }
  0x2c   :  { %450 = vmatprep.subr.bf16.mxu0 %v516_v5  ;;  %455 = vmatpush3.bf16.msra.mxu1 %v454_v14  ;;  %v399_v31 = vld [vmem:[%s645_s8] ss:$0 sm:$0xff] }
  0x2d   :  { %456 = vmatprep.subr.bf16.mxu1 %v516_v5 }
  0x2f   :  { %452 = vmatpush3.bf16.msra.mxu0 %v451_v11 }
  0x30   :  { %458 = vmatpush3.bf16.msra.mxu1 %v457_v25 }
  0xfb   :  { %v130_v15 = vpop.f32.mrb[0].mxu0  ;;  %v203_v16 = vpop.f32.mrb[0].mxu1 }
  0xfc   :  { %v204_v18 = vadd.f32 %v203_v16, %v130_v15  ;;  %v419_v19 = vpop.f32.mrb[1].mxu0  ;;  %v424_v20 = vpop.f32.mrb[1].mxu1 }
  0xfe   :  { %v214_v21 = vadd.f32 %v396_v17, %v204_v18 }
 0x100   :  { %v215_v22 = vmax.f32 %v214_v21, 0.0 }
 0x102   :  { %434 = vmatmul.mubr.msk.f32.vlgmr.msra.gmra.mrb[2].mxu0 %vm227_vm2, %v215_v22 }
 0x1d5   :  { %v297_v27 = vpop.f32.mrb[2].mxu0 }
 0x1d6   :  { %v298_v28 = vadd.f32 %v397_v26, %v297_v27  ;;  %v435_v29 = vpop.f32.mrb[3].mxu0 }
 0x1d8   :  { %v301_v30 = vmax.f32 %v298_v28, 0.0 }
 0x1da   :  { %445 = vmatmul.mubr.msk.f32.vlgmr.msra.gmra.mrb[2].mxu1 %vm227_vm2, %v301_v30 }
 0x2ad   :  { %v382_v32 = vpop.f32.mrb[2].mxu1 }
 0x2ae   :  { %v383_v33 = vadd.f32 %v399_v31, %v382_v32  ;;  %v446_v34 = vpop.f32.mrb[3].mxu1 }
 0x2b0   :  { %387 = vst.msk [vmem:[%s646_s9] sm:$0xff] %vm386_vm3, %v383_v33 }
 0x2b1   :  { %392 = vsyncpa [#allocation3], 1 }
 0x2b2   :  { %393 = vsyncpa [#allocation5], 1 }

</bundles_post_ra>
